<compile_context>
chip_gen: v7x
topology: tpu7x:2x2x1
jax: 0.10.0
libtpu: 0.0.40
codegen_flags: <defaults>
</compile_context>

<pallas_src>
import functools
import math

import jax
import jax.numpy as jnp
import numpy as np
from jax import lax
from jax.experimental import pallas as pl
from jax.experimental.pallas import tpu as pltpu


# ---------------------------------------------------------------------------
# Tiled projection matmul:  x [M, K] @ weight.T, weight in torch [N, K] layout
# ---------------------------------------------------------------------------
def _pick_tile(dim, pref):
    for t in (pref, 1024, 512, 256, 128):
        if t <= dim and dim % t == 0:
            return t
    # TODO(synk): dims with no 128-multiple divisor fall back to a full-dim block.
    return dim


def _matmul_kernel(x_ref, w_ref, o_ref, acc_ref):
    @pl.when(pl.program_id(2) == 0)
    def _init():
        acc_ref[...] = jnp.zeros_like(acc_ref)

    # contract last dims: x [tm, tk] . w [tn, tk] -> [tm, tn]  (no transpose copy,
    # no in-kernel casts -- inputs are already bf16)
    acc_ref[...] += lax.dot_general(
        x_ref[...], w_ref[...],
        dimension_numbers=(((1,), (1,)), ((), ())),
        preferred_element_type=jnp.float32)

    @pl.when(pl.program_id(2) == pl.num_programs(2) - 1)
    def _store():
        o_ref[...] = acc_ref[...].astype(o_ref.dtype)


def linear_no_bias(x, weight, *, out_dtype=jnp.bfloat16, tm=512, tn=512, tk=1024):
    """x: [M, K], weight: [N, K] (torch nn.Linear layout) -> x @ weight.T : [M, N]."""
    if x.dtype != jnp.bfloat16:
        x = x.astype(jnp.bfloat16)
    if weight.dtype != jnp.bfloat16:
        weight = weight.astype(jnp.bfloat16)
    M, K = x.shape
    N, K2 = weight.shape
    assert K == K2
    tm, tn, tk = _pick_tile(M, tm), _pick_tile(N, tn), _pick_tile(K, tk)
    grid = (M // tm, N // tn, K // tk)
    return pl.pallas_call(
        _matmul_kernel,
        out_shape=jax.ShapeDtypeStruct((M, N), out_dtype),
        grid_spec=pltpu.PrefetchScalarGridSpec(
            num_scalar_prefetch=0,
            grid=grid,
            in_specs=[pl.BlockSpec((tm, tk), lambda i, j, k: (i, k)),
                      pl.BlockSpec((tn, tk), lambda i, j, k: (j, k))],
            out_specs=pl.BlockSpec((tm, tn), lambda i, j, k: (i, j)),
            scratch_shapes=[pltpu.VMEM((tm, tn), jnp.float32)]),
        compiler_params=pltpu.CompilerParams(
            dimension_semantics=("parallel", "parallel", "arbitrary"),
            vmem_limit_bytes=48 * 1024 * 1024),
    )(x, weight)


# ---------------------------------------------------------------------------
# Local (sliding-chunk) attention kernel
#   grid = (B, C)   both axes "parallel" (independent iterations)
#   q_ref  : (1, 1, W*H, Dh)     bf16   current (batch, chunk) query block
#   kv_ref : (1, nc_k*W, 2*Dh)   bf16   whole-batch KV, resident across chunks
#   o_ref  : (1, 1, W*H, Dh)     bf16   context (position-major, head, Dh rows)
# ---------------------------------------------------------------------------
def _local_attn_kernel(q_ref, kv_ref, o_ref, *, nc_k, w, d_head, q_sub, n_sub):
    c = pl.program_id(1)
    # Contiguous 3-chunk window, clamped to stay in range.  Any slab slot whose
    # chunk falls outside {c-1, c, c+1} is zeroed below, which reproduces the
    # reference's zero-padding semantics exactly (score 0 -- not -inf -- and
    # value 0 still count toward the 3W softmax denominator).
    c_start = jnp.clip(c - 1, 0, nc_k - 3)
    row0 = pl.multiple_of(c_start * w, w)

    slab = kv_ref[0, pl.ds(row0, 3 * w), :]                    # [3W, 2*Dh] bf16

    slot_chunk = c_start + lax.broadcasted_iota(jnp.int32, (3 * w, 1), 0) // w
    valid = (jnp.abs(slot_chunk - c) <= 1).astype(jnp.bfloat16)  # [3W, 1]

    k_slab = slab[:, :d_head] * valid                          # [3W, Dh] (zeroed out-of-window)
    v_slab = slab[:, d_head:] * valid                          # [3W, Dh]

    dn = (((1,), (1,)), ((), ()))   # contract Dh of q against Dh of k -- no k.T copy

    def _subtile(s):
        r0 = s * q_sub
        if not isinstance(r0, int):
            r0 = pl.multiple_of(r0, q_sub)
        q = q_ref[0, 0, pl.ds(r0, q_sub), :]                   # [QT, Dh] bf16
        scores = lax.dot_general(q, k_slab, dn,
                                 preferred_element_type=jnp.float32)   # [QT, 3W]
        m = jnp.max(scores, axis=-1, keepdims=True)
        e = jnp.exp(scores - m)                                # f32 (see TODO: bf16 on v6e/v7x)
        denom = jnp.sum(e, axis=-1, keepdims=True)
        ctx = jnp.dot(e.astype(jnp.bfloat16), v_slab,
                      preferred_element_type=jnp.float32)      # [QT, Dh]
        ctx = ctx * pl.reciprocal(denom, approx=True)          # deferred normalization (EUP)
        o_ref[0, 0, pl.ds(r0, q_sub), :] = ctx.astype(o_ref.dtype)

    if n_sub == 1:
        _subtile(0)
    else:
        def body(s, carry):
            _subtile(s)
            return carry
        lax.fori_loop(0, n_sub, body, 0)


def _pick_q_subtile(rows, w):
    """Largest multiple-of-8 divisor of `rows` keeping the [QT, 3W] f32 score
    tile around <= 1.5 MiB (and QT <= 512); falls back to `rows` itself."""
    cap = max(8, min(512, (3 * 512 * 1024) // max(3 * w * 4, 1)))
    best = None
    d = 8
    while d <= min(rows, cap):
        if rows % d == 0:
            best = d
        d += 8
    return best if best is not None else rows


def _vmem_capacity_bytes():
    try:
        return int(pltpu.get_tpu_info().vmem_capacity_bytes)
    except Exception:
        return 64 * 1024 * 1024   # conservative (v7x per-core VMEM)


def local_attention_forward(q_in, kv_in, w_q, w_kv, w_concat, *, n_head, w):
    bsz, length, d_model = q_in.shape
    d_head = d_model // n_head
    assert length % w == 0 and d_model % n_head == 0
    nc = length // w
    rows = w * n_head

    # Cast activations/weights to bf16 ONCE here; fold the 1/sqrt(Dh) softmax
    # scale into w_q (exact on the weight, zero per-token cost).
    scale = 1.0 / math.sqrt(d_head)
    q_b = q_in.astype(jnp.bfloat16)
    kv_b = kv_in.astype(jnp.bfloat16)
    w_q_b = (w_q * scale).astype(jnp.bfloat16)
    w_kv_b = w_kv.astype(jnp.bfloat16)
    w_concat_b = w_concat.astype(jnp.bfloat16)

    # ---- projections (tiled Pallas matmuls, bf16 in / bf16 out) ----
    q_proj = linear_no_bias(q_b.reshape(-1, d_model), w_q_b)          # [B*L, D]    bf16
    kv_proj = linear_no_bias(kv_b.reshape(-1, d_model), w_kv_b)       # [B*L, 2Dh]  bf16

    # chunked layouts (contiguous reshapes, no copies, no K/V column slicing)
    q_chunk = q_proj.reshape(bsz, nc, rows, d_head)                   # [B, C, W*H, Dh]
    kv_flat = kv_proj.reshape(bsz, nc * w, 2 * d_head)                # [B, C*W, 2Dh]

    nc_k = nc
    if nc < 3:   # degenerate short sequences: pad the chunk axis so a 3-chunk
        nc_k = 3  # slab always exists (padded chunks are zeros = reference pad).
        kv_flat = jnp.pad(kv_flat, ((0, 0), (0, (nc_k - nc) * w), (0, 0)))

    q_sub = _pick_q_subtile(rows, w)
    n_sub = rows // q_sub

    # ---- VMEM budget: whole-batch KV stays resident across the chunk axis ----
    vmem_cap = _vmem_capacity_bytes()
    kv_block_bytes = nc_k * w * 2 * d_head * 2        # one bf16 buffer
    q_block_bytes = rows * d_head * 2
    kv_buffers = 2 if 2 * kv_block_bytes <= int(0.4 * vmem_cap) else 1
    vmem_needed = kv_buffers * kv_block_bytes + 4 * q_block_bytes + (8 << 20)
    vmem_limit = int(min(max(vmem_needed, 32 << 20), 0.92 * vmem_cap))

    kv_kwargs = {} if kv_buffers == 2 else {"pipeline_mode": pl.Buffered(1)}

    q_spec = pl.BlockSpec((1, 1, rows, d_head), lambda b, c: (b, c, 0, 0))
    # whole-batch KV block; constant chunk index => DMA'd once per batch and
    # kept resident in VMEM across the chunk axis (1x HBM KV traffic).
    kv_spec = pl.BlockSpec((1, nc_k * w, 2 * d_head), lambda b, c: (b, 0, 0),
                           **kv_kwargs)

    kernel = functools.partial(_local_attn_kernel, nc_k=nc_k, w=w,
                               d_head=d_head, q_sub=q_sub, n_sub=n_sub)

    ctx = pl.pallas_call(
        kernel,
        out_shape=jax.ShapeDtypeStruct((bsz, nc, rows, d_head), jnp.bfloat16),
        grid_spec=pltpu.PrefetchScalarGridSpec(
            num_scalar_prefetch=0,
            grid=(bsz, nc),
            in_specs=[q_spec, kv_spec],
            out_specs=q_spec),
        compiler_params=pltpu.CompilerParams(
            dimension_semantics=("parallel", "parallel"),
            vmem_limit_bytes=vmem_limit),
    )(q_chunk, kv_flat)

    # [B, C, W*H, Dh] is bit-identical in memory to [B*L, d_model] (pos-major,
    # feature = h*Dh + d), so this reshape is free.
    out = linear_no_bias(ctx.reshape(-1, d_model), w_concat_b,
                         out_dtype=jnp.float32)
    return out.reshape(bsz, length, d_model)


# ---------------------------------------------------------------------------
# Pure-JAX f32 reference (mirrors the PyTorch module exactly)
# ---------------------------------------------------------------------------
def _reference(q_in, kv_in, w_q, w_kv, w_concat, *, n_head, w):
    bsz, length, d_model = q_in.shape
    d_head = d_model // n_head
    nc = length // w

    q = q_in @ w_q.T
    kv = kv_in @ w_kv.T
    k, v = kv[..., :d_head], kv[..., d_head:]
    q = q.reshape(bsz, length, n_head, d_head) / math.sqrt(d_head)

    chunk_q = q.reshape(bsz, nc, w, n_head, d_head)
    chunk_k = k.reshape(bsz, nc, w, 1, d_head)
    chunk_v = v.reshape(bsz, nc, w, 1, d_head)

    def ext(x):
        prev = jnp.pad(x[:, :-1], ((0, 0), (1, 0), (0, 0), (0, 0), (0, 0)))
        nxt = jnp.pad(x[:, 1:], ((0, 0), (0, 1), (0, 0), (0, 0), (0, 0)))
        return jnp.stack((prev, x, nxt), axis=-1)  # [b,c,w,1,d,3]

    k_ext = ext(chunk_k)
    v_ext = ext(chunk_v)

    attn = jnp.einsum('bcxhd,bcyode->bcxhey', chunk_q, k_ext)
    attn = attn.reshape(bsz, length, n_head, 3 * w)
    probs = jax.nn.softmax(attn, axis=-1)

    chunk_prob = probs.reshape(bsz, nc, w, n_head, 3, w)
    ctx = jnp.einsum('bcwhpd,bcdoep->bcwhe', chunk_prob, v_ext)
    out = ctx.reshape(bsz, length, d_model)
    return out @ w_concat.T


if __name__ == "__main__":
    bsz, length, d_model, n_head, w = 2, 16, 32, 4, 4
    d_head = d_model // n_head

    key = jax.random.PRNGKey(0)
    k1, k2, k3, k4, k5 = jax.random.split(key, 5)
    q_in = jax.random.normal(k1, (bsz, length, d_model), jnp.float32)
    kv_in = jax.random.normal(k2, (bsz, length, d_model), jnp.float32)
    # torch nn.Linear weight layout: [out_features, in_features]
    w_q = 0.1 * jax.random.normal(k3, (d_model, d_model), jnp.float32)
    w_kv = 0.1 * jax.random.normal(k4, (2 * d_head, d_model), jnp.float32)
    w_concat = 0.1 * jax.random.normal(k5, (d_model, d_model), jnp.float32)

    out = local_attention_forward(q_in, kv_in, w_q, w_kv, w_concat,
                                  n_head=n_head, w=w)
    out = jax.block_until_ready(out)

    ref = _reference(q_in, kv_in, w_q, w_kv, w_concat, n_head=n_head, w=w)
    assert out.shape == (bsz, length, d_model)
    # bf16 MXU inputs + approx reciprocal -> compare with bf16-level tolerance
    np.testing.assert_allclose(np.asarray(out), np.asarray(ref),
                               rtol=2e-2, atol=2e-2)
    print("KERNEL_OK")
</pallas_src>

<mosaic_0001>
module attributes {stable_mosaic.version = 11 : i64} {
  func.func @_matmul_kernel(%arg0: i32, %arg1: i32, %arg2: i32, %arg3: memref<32x32xbf16, #tpu.memory_space<vmem>>, %arg4: memref<32x32xbf16, #tpu.memory_space<vmem>>, %arg5: memref<32x32xbf16, #tpu.memory_space<vmem>>, %arg6: memref<32x32xf32, #tpu.memory_space<vmem>>) attributes {dimension_semantics = [#tpu.dimension_semantics<parallel>, #tpu.dimension_semantics<parallel>, #tpu.dimension_semantics<arbitrary>], iteration_bounds = array<i64: 1, 1, 1>, scalar_prefetch = 0 : i64, scratch_operands = 1 : i64, tpu.core_type = #tpu.core_type<tc>, window_params = [{transform_indices = @transform_0, window_bounds = array<i64: 32, 32>}, {transform_indices = @transform_1, window_bounds = array<i64: 32, 32>}, {transform_indices = @transform_2, window_bounds = array<i64: 32, 32>}]} {
    %c0_i32 = arith.constant 0 : i32
    %0 = arith.cmpi eq, %arg2, %c0_i32 : i32
    %1 = arith.extui %0 : i1 to i32
    %c0_i32_0 = arith.constant 0 : i32
    %2 = arith.cmpi ne, %1, %c0_i32_0 : i32
    scf.if %2 {
      %cst_10 = arith.constant 0.000000e+00 : f32
      %12 = vector.broadcast %cst_10 : f32 to vector<32x32xf32>
      %c0_11 = arith.constant 0 : index
      %c0_12 = arith.constant 0 : index
      %13 = vector.load %arg6[%c0_11, %c0_12] : memref<32x32xf32, #tpu.memory_space<vmem>>, vector<32x32xf32>
      tpu.vector_store %arg6[%c0_11, %c0_12], %12 {strides = array<i32>} : memref<32x32xf32, #tpu.memory_space<vmem>>, vector<32x32xf32>,
    } else {
    }
    %c0 = arith.constant 0 : index
    %c0_1 = arith.constant 0 : index
    %3 = vector.load %arg6[%c0, %c0_1] : memref<32x32xf32, #tpu.memory_space<vmem>>, vector<32x32xf32>
    %c0_2 = arith.constant 0 : index
    %c0_3 = arith.constant 0 : index
    %4 = vector.load %arg3[%c0_2, %c0_3] : memref<32x32xbf16, #tpu.memory_space<vmem>>, vector<32x32xbf16>
    %c0_4 = arith.constant 0 : index
    %c0_5 = arith.constant 0 : index
    %5 = vector.load %arg4[%c0_4, %c0_5] : memref<32x32xbf16, #tpu.memory_space<vmem>>, vector<32x32xbf16>
    %cst = arith.constant dense<0.000000e+00> : vector<32x32xf32>
    %6 = tpu.matmul %4, %5, %cst {dimension_numbers = #tpu.dot_dimension_numbers<[1], [1], [0], [0], [0, 0, 1, 0], [], []>} : vector<32x32xbf16>, vector<32x32xbf16>, vector<32x32xf32> -> vector<32x32xf32>
    %7 = arith.addf %3, %6 : vector<32x32xf32>
    %c0_6 = arith.constant 0 : index
    %c0_7 = arith.constant 0 : index
    %8 = vector.load %arg6[%c0_6, %c0_7] : memref<32x32xf32, #tpu.memory_space<vmem>>, vector<32x32xf32>
    tpu.vector_store %arg6[%c0_6, %c0_7], %7 {strides = array<i32>} : memref<32x32xf32, #tpu.memory_space<vmem>>, vector<32x32xf32>,
    %c0_i32_8 = arith.constant 0 : i32
    %9 = arith.cmpi eq, %arg2, %c0_i32_8 : i32
    %10 = arith.extui %9 : i1 to i32
    %c0_i32_9 = arith.constant 0 : i32
    %11 = arith.cmpi ne, %10, %c0_i32_9 : i32
    scf.if %11 {
      %c0_10 = arith.constant 0 : index
      %c0_11 = arith.constant 0 : index
      %12 = vector.load %arg6[%c0_10, %c0_11] : memref<32x32xf32, #tpu.memory_space<vmem>>, vector<32x32xf32>
      %13 = arith.truncf %12 : vector<32x32xf32> to vector<32x32xbf16>
      %c0_12 = arith.constant 0 : index
      %c0_13 = arith.constant 0 : index
      %14 = vector.load %arg5[%c0_12, %c0_13] : memref<32x32xbf16, #tpu.memory_space<vmem>>, vector<32x32xbf16>
      tpu.vector_store %arg5[%c0_12, %c0_13], %13 {strides = array<i32>} : memref<32x32xbf16, #tpu.memory_space<vmem>>, vector<32x32xbf16>,
    } else {
    }
    return
  }
  func.func @transform_0(%arg0: i32, %arg1: i32, %arg2: i32) -> (i32, i32) {
    %c0_i32 = arith.constant 0 : i32
    return %arg0, %arg2 : i32, i32
  }
  func.func @transform_1(%arg0: i32, %arg1: i32, %arg2: i32) -> (i32, i32) {
    %c0_i32 = arith.constant 0 : i32
    return %arg1, %arg2 : i32, i32
  }
  func.func @transform_2(%arg0: i32, %arg1: i32, %arg2: i32) -> (i32, i32) {
    %c0_i32 = arith.constant 0 : i32
    return %arg0, %arg1 : i32, i32
  }
}

</mosaic_0001>

<bundles_post_ra>
// kernel: tpu_custom_call.1
= control target key start
LH: loop header
LB: loop body
LE: loop exit
PB: predicated region body
PF: predicated region fallthrough
CT: control target
= control target key end

     0   :  { %7 = vsyncpa [#allocation4], 0  ;;  %s388_s0 = inlined_call_operand.hbm [shape: bf16[32,32], index: 0, kind: input, shape index: {}]   ;;  %s389_s1 = inlined_call_operand.hbm [shape: bf16[32,32], index: 1, kind: input, shape index: {}]   ;;  %s390_s2 = inlined_call_operand.hbm [shape: bf16[32,32], index: 2, kind: output, shape index: {}]  }
   0x1   :  { %8 = vsyncpa [#allocation7], 0 }
   0x2   :  { %9 = vsyncpa [#allocation5], 0  ;;  %s308_s9 = smov [#allocation3]   ;;  %s236_s13 = scalar_lea.hbm %s388_s0, 256 }
   0x3   :  { %s15_s10 = sshll.u32 %s308_s9, 4  ;;  %p237_p0 = scmp.ne.s32.totalorder %s388_s0, %s236_s13  ;;  %s16_s10 = int_to_ptr.vmem [resolvable:$true] %s15_s10 }
   0x4   :  { %p240_p1 = scmp.lt.u32.totalorder %s236_s13, %s388_s0 }
   0x6   :  { %p242_p2 = pnand %p240_p1, %p237_p0 }
   0x8   :  { %245 = shalt.err (!%p242_p2)
}
   0x9   :  { %s246_s18 = scalar_lea.vmem %s16_s10, 256  ;;  %p251_p4 = scmp.lt.s32.totalorder %s16_s10, %s16_s10 }
   0xa   :  { %p247_p3 = scmp.ne.s32.totalorder %s16_s10, %s246_s18  ;;  %p252_p5 = scmp.lt.s32.totalorder %s246_s18, %s246_s18 }
   0xc   :  { %p253_p6 = por %p252_p5, %p251_p4 }
   0xe   :  { %p254_p7 = pnand %p253_p6, %p247_p3 }
  0x10   :  { %257 = shalt.err (!%p254_p7)
}
  0x11   :  { %s309_s19 = smov 64   ;;  %s310_s20 = smov 4  }
  0x12   :  { %21 = dma.hbm_to_vmem [thread:$0]  %s388_s0, 256, %s16_s10, [#allocation4], %s309_s19, %s309_s19, %s310_s20  }
  0x13   :  { %s311_s23 = smov [#allocation6]   ;;  %s258_s27 = scalar_lea.hbm %s389_s1, 256 }
  0x14   :  { %s27_s24 = sshll.u32 %s311_s23, 4  ;;  %p259_p8 = scmp.ne.s32.totalorder %s389_s1, %s258_s27  ;;  %s28_s24 = int_to_ptr.vmem [resolvable:$true] %s27_s24 }
  0x15   :  { %p262_p9 = scmp.lt.u32.totalorder %s258_s27, %s389_s1 }
  0x17   :  { %p264_p10 = pnand %p262_p9, %p259_p8 }
  0x19   :  { %267 = shalt.err (!%p264_p10)
}
  0x1a   :  { %s268_s4 = scalar_lea.vmem %s28_s24, 256  ;;  %p273_p12 = scmp.lt.s32.totalorder %s28_s24, %s28_s24 }
  0x1b   :  { %p269_p11 = scmp.ne.s32.totalorder %s28_s24, %s268_s4  ;;  %p274_p13 = scmp.lt.s32.totalorder %s268_s4, %s268_s4 }
  0x1d   :  { %p275_p0 = por %p274_p13, %p273_p12 }
  0x1f   :  { %p276_p1 = pnand %p275_p0, %p269_p11 }
  0x21   :  { %279 = shalt.err (!%p276_p1)
}
  0x22   :  { %33 = dma.hbm_to_vmem [thread:$0]  %s389_s1, 256, %s28_s24, [#allocation7], %s309_s19, %s309_s19, %s310_s20  }
  0x23   :  { %302 = dma.done.wait [#allocation4], 256  }
  0x24   :  { %303 = vsyncadd [#allocation4], 4294967040 }
  0x25   :  { %304 = dma.done.wait [#allocation7], 256  }
  0x26   :  { %305 = vsyncadd [#allocation7], 4294967040  ;;  %vm45_vm0 = vcmask 261120   ;;  %v312_v0 = vmov 0.0   ;;  %v232_v1 = vld [vmem:[#allocation6] sm:$0xff]   ;;  %v233_v2 = vld [vmem:[#allocation6 + $0x8] sm:$0xff]  }
  0x27   :  { %48 = vst.msk [vmem:[#allocation2 + $0x10] sm:$0xff] %vm45_vm0, %v312_v0  ;;  %46 = vst.msk [vmem:[#allocation2] sm:$0xff] %vm45_vm0, %v312_v0  ;;  %224 = vmatprep.subr.msk.bf16.mxu0 %vm45_vm0, %v232_v1  ;;  %v90_v3 = vsel %vm45_vm0, %v232_v1, 0  ;;  %v234_v4 = vld [vmem:[#allocation3] sm:$0xff]   ;;  %v93_v5 = vsel %vm45_vm0, %v233_v2, 0  ;;  %v235_v6 = vld [vmem:[#allocation3 + $0x8] sm:$0xff]  }
  0x28   :  { %47 = vst.msk [vmem:[#allocation2 + $0x8] sm:$0xff] %vm45_vm0, %v312_v0  ;;  %49 = vst.msk [vmem:[#allocation2 + $0x18] sm:$0xff] %vm45_vm0, %v312_v0  ;;  %217 = vmatpush3.bf16.xpose.msra.mxu0 %v90_v3  ;;  %220 = vmatprep.mubr.msk.bf16.mxu0 %vm45_vm0, %v234_v4  ;;  %vm175_vm1 = vcmask 257024   ;;  %s313_s1 = smov [#allocation8]  }
  0x29   :  { %225 = vmatprep.subr.msk.bf16.mxu0 %vm45_vm0, %v233_v2  ;;  %s185_s6 = sshll.u32 %s313_s1, 4  ;;  %s186_s6 = int_to_ptr.vmem [resolvable:$true] %s185_s6 }
  0x2a   :  { %s280_s7 = scalar_lea.vmem %s186_s6, 256  ;;  %p285_p3 = scmp.lt.s32.totalorder %s186_s6, %s186_s6 }
  0x2b   :  { %p281_p2 = scmp.ne.s32.totalorder %s186_s6, %s280_s7  ;;  %p286_p4 = scmp.lt.s32.totalorder %s280_s7, %s280_s7 }
  0x2d   :  { %p287_p5 = por %p286_p4, %p285_p3 }
  0x2e   :  { %v52_v7 = vld [vmem:[#allocation2 + $0x10] sm:$0xff]  ;;  %v50_v8 = vld [vmem:[#allocation2] sm:$0xff] }
  0x2f   :  { %v53_v10 = vld [vmem:[#allocation2 + $0x18] sm:$0xff]  ;;  %v51_v13 = vld [vmem:[#allocation2 + $0x8] sm:$0xff]  ;;  %p288_p6 = pnand %p287_p5, %p281_p2 }
  0x30   :  { %219 = vmatpush3.bf16.xpose.msra.mxu0 %v93_v5 }
  0x37   :  { %221 = vmatmul.mubr.msk.bf16.vlgmr.msra.gmra.mrb[0].mxu0 %vm45_vm0, %v235_v6 }
 0x10a   :  { %v222_v9 = vpop.f32.mrb[0].mxu0 }
 0x10b   :  { %v146_v11 = vadd.f32 %v222_v9, %v52_v7  ;;  %v129_v12 = vpop.f32.mrb[1].mxu0 }
 0x10c   :  { %v144_v14 = vadd.f32 %v129_v12, %v50_v8  ;;  %v223_v15 = vpop.f32.mrb[2].mxu0 }
 0x10d   :  { %150 = vst.msk [vmem:[#allocation2 + $0x10] sm:$0xff] %vm45_vm0, %v146_v11  ;;  %v147_v16 = vadd.f32 %v223_v15, %v53_v10  ;;  %v132_v17 = vpop.f32.mrb[3].mxu0 }
 0x10e   :  { %148 = vst.msk [vmem:[#allocation2] sm:$0xff] %vm45_vm0, %v144_v14  ;;  %v145_v18 = vadd.f32 %v132_v17, %v51_v13 }
 0x10f   :  { %151 = vst.msk [vmem:[#allocation2 + $0x18] sm:$0xff] %vm45_vm0, %v147_v16 }
 0x110   :  { %149 = vst.msk [vmem:[#allocation2 + $0x8] sm:$0xff] %vm45_vm0, %v145_v18 }
 0x114   :  { %v157_v19 = vld [vmem:[#allocation2 + $0x10] sm:$0xff] }
 0x115   :  { %v155_v20 = vld [vmem:[#allocation2] sm:$0xff]  ;;  %v210_v21 = vpack.c.bf16 %v157_v19, %v157_v19 }
 0x116   :  { %v158_v22 = vld [vmem:[#allocation2 + $0x18] sm:$0xff]  ;;  %v208_v23 = vpack.c.bf16 %v155_v20, %v155_v20 }
 0x117   :  { %v156_v24 = vld [vmem:[#allocation2 + $0x8] sm:$0xff]  ;;  %v211_v25 = vpack.c.bf16 %v158_v22, %v158_v22  ;;  %178 = vst.msk [vmem:[#allocation8 + $0x8] sm:$0xf] %vm175_vm1, %v210_v21 }
 0x118   :  { %v209_v26 = vpack.c.bf16 %v156_v24, %v156_v24  ;;  %176 = vst.msk [vmem:[#allocation8] sm:$0xf] %vm175_vm1, %v208_v23 }
 0x119   :  { %179 = vst.msk [vmem:[#allocation8 + $0xc] sm:$0xf] %vm175_vm1, %v211_v25 }
 0x11a   :  { %177 = vst.msk [vmem:[#allocation8 + $0x4] sm:$0xf] %vm175_vm1, %v209_v26 }
 0x11b   :  { %291 = shalt.err (!%p288_p6)
}
 0x11c   :  { %s292_s10 = scalar_lea.hbm %s390_s2, 256 }
 0x11d   :  { %p293_p7 = scmp.ne.s32.totalorder %s390_s2, %s292_s10  ;;  %p296_p8 = scmp.lt.u32.totalorder %s292_s10, %s390_s2 }
 0x11f   :  { %p298_p9 = pnand %p296_p8, %p293_p7 }
 0x121   :  { %301 = shalt.err (!%p298_p9)
}
 0x122   :  { %191 = dma.vmem_to_hbm [thread:$0]  %s186_s6, 256, %s390_s2, [#allocation5], %s309_s19, %s309_s19, %s310_s20  }
 0x123   :  { %306 = dma.done.wait [#allocation5], 256  }
 0x124   :  { %307 = vsyncadd [#allocation5], 4294967040 }
 0x125   :  { %195 = vsyncpa [#allocation4], 1 }
 0x126   :  { %196 = vsyncpa [#allocation7], 1 }
 0x127   :  { %197 = vsyncpa [#allocation5], 1 }

</bundles_post_ra>
